<compile_context>
chip_gen: v7x
topology: tpu7x:2x2x1
jax: 0.10.0
libtpu: 0.0.40
codegen_flags: <defaults>
</compile_context>

<pallas_src>
import functools

import jax
import jax.numpy as jnp
from jax.experimental import pallas as pl
from jax.experimental.pallas import tpu as pltpu

_LANE = 128
_MIB = 1024 * 1024


def _round_up(n, m):
    return ((n + m - 1) // m) * m


def _sublane(dtype):
    # sublane packing of the second-minor dim: 8 rows for 32-bit, 16 for 16-bit.
    return max(8, 32 // jnp.dtype(dtype).itemsize)


def _vmem_budget():
    """(budget_bytes, vmem_limit_bytes) derived from the local TPU generation."""
    try:
        cap = int(pltpu.get_tpu_info().vmem_capacity_bytes)
    except Exception:
        cap = 64 * _MIB            # conservative fallback (v7x-sized: 64 MiB / TC)
    limit = int(cap * 0.70)        # v5e/v6e ~90 MiB, v7x ~45 MiB
    budget = int(limit * 0.80)     # headroom for Mosaic internal scratch
    return budget, limit


def prepare_onenet_head_params(w1, b1, w2, b2, spatial_size,
                               mxu_dtype=jnp.bfloat16):
    """One-time parameter prep — call at model init / cache, NOT per forward.

    * pads hidden / classnum to lane width (128) so both matmul N dims and the
      output store are lane-dense (unmasked vst)
    * folds the 1/S mean of adaptive_avg_pool2d into w1 (scale computed in f32,
      cast once at the end)
    * casts weights to `mxu_dtype` (bf16 default: native MXU datapath, half the
      weight HBM bytes); biases stay f32 (added to the f32 accumulator).
    """
    C, hidden = w1.shape
    classnum = w2.shape[1]
    Hp = _round_up(hidden, _LANE)
    Np = _round_up(classnum, _LANE)

    inv_s = jnp.float32(1.0 / spatial_size)
    w1_scaled = (w1.astype(jnp.float32) * inv_s).astype(mxu_dtype)
    w1p = jnp.zeros((C, Hp), mxu_dtype).at[:, :hidden].set(w1_scaled)
    b1p = jnp.zeros((1, Hp), jnp.float32).at[:, :hidden].set(
        b1.reshape(1, hidden).astype(jnp.float32))
    w2p = jnp.zeros((Hp, Np), mxu_dtype).at[:hidden, :classnum].set(
        w2.astype(mxu_dtype))
    b2p = jnp.zeros((1, Np), jnp.float32).at[:, :classnum].set(
        b2.reshape(1, classnum).astype(jnp.float32))

    return dict(w1p=w1p, b1p=b1p, w2p=w2p, b2p=b2p,
                C=C, hidden=hidden, classnum=classnum,
                Hp=Hp, Np=Np, spatial_size=spatial_size)


def onenet_head_kernel(x_ref, w1_ref, b1_ref, w2_ref, b2_ref, o_ref, *, pool_axis):
    """One batch tile of the BaseOneNet head.

    x_ref : [TB, C, S] (NCHW path, pool_axis=2) or [TB, S, C] (NHWC, pool_axis=1)
    w1_ref: [C,  Hp]   first Linear weight, pre-scaled by 1/S (mean folded in)
    b1_ref: [1,  Hp]   f32 bias (zero-padded)
    w2_ref: [Hp, Np]   second Linear weight (zero-padded)
    b2_ref: [1,  Np]   f32 bias (zero-padded)
    o_ref : [TB, Np]   padded logits
    """
    # adaptive_avg_pool2d(.,(1,1)) + flatten == mean over spatial; 1/S is folded
    # into w1, so a plain sum with f32 accumulation suffices.
    pooled = jnp.sum(x_ref[...], axis=pool_axis, dtype=jnp.float32)    # [TB, C]

    # Linear(C, C//2) -> ReLU     (Dropout(0.4) is identity in eval mode)
    h = jnp.dot(pooled.astype(w1_ref.dtype), w1_ref[...],
                preferred_element_type=jnp.float32) + b1_ref[...]      # [TB, Hp]
    h = jnp.maximum(h, 0.0)

    # Linear(C//2, classnum)
    out = jnp.dot(h.astype(w2_ref.dtype), w2_ref[...],
                  preferred_element_type=jnp.float32) + b2_ref[...]    # [TB, Np]
    o_ref[...] = out.astype(o_ref.dtype)


def _choose_batch_tile(B, row_slab, extra_row, fixed_bytes, budget):
    """Pick a batch tile whose *padded* VMEM footprint fits the budget."""
    avail = budget - fixed_bytes
    denom = 2 * row_slab + extra_row        # feature tile is double-buffered
    tb = max(1, avail // denom) if avail > 0 else 1
    if tb >= B:
        return B
    # Output block [TB, Np]: second-minor dim must be a multiple of 8 (or the
    # full batch).  NOTE: if even 8 rows exceed the budget this still returns 8
    # (the minimum legal tile); vmem_limit headroom absorbs that corner case.
    return int(max(8, (tb // 8) * 8))


def base_one_net_head(feat, params, *, layout="NCHW", batch_tile=None):
    """feat: [B,C,H,W] ("NCHW", PyTorch-native) or [B,H,W,C] ("NHWC", preferred).

    NHWC is preferred: the feature DMA is lane-dense in C and the pool is a
    cheap sublane reduction (VALU) instead of a cross-lane XLU reduce.
    Neither path does any HBM transpose — only free reshapes.
    """
    if layout == "NCHW":
        B, C, H, W = feat.shape
        S = H * W
        x = feat.reshape(B, C, S)
        inner = (C, S)                       # (sublane dim, lane dim) per row
        pool_axis = 2
        block_of = lambda tb: (tb, C, S)
    elif layout == "NHWC":
        B, H, W, C = feat.shape
        S = H * W
        x = feat.reshape(B, S, C)
        inner = (S, C)
        pool_axis = 1
        block_of = lambda tb: (tb, S, C)
    else:
        raise ValueError(f"unknown layout {layout!r}")

    if C != params["C"] or S != params["spatial_size"]:
        raise ValueError("feature map does not match prepared head params")

    w1p, b1p = params["w1p"], params["b1p"]
    w2p, b2p = params["w2p"], params["b2p"]
    Hp, Np, classnum = params["Hp"], params["Np"], params["classnum"]

    budget, vmem_limit = _vmem_budget()
    it = jnp.dtype(x.dtype).itemsize

    # Padded VMEM bytes of one batch row of the feature tile.
    row_slab = (_round_up(inner[0], _sublane(x.dtype))
                * _round_up(inner[1], _LANE) * it)
    # f32 intermediates per batch row: possible f32 convert of a sub-f32 tile,
    # pooled [.,C], h [.,Hp], and the double-buffered f32 output block [.,Np].
    extra_row = (0 if jnp.dtype(x.dtype) == jnp.dtype(jnp.float32)
                 else _round_up(inner[0], 8) * _round_up(inner[1], _LANE) * 4)
    extra_row += 4 * (_round_up(C, _LANE) + Hp + 2 * Np)

    weight_bytes = sum(int(a.size) * a.dtype.itemsize
                       for a in (w1p, b1p, w2p, b2p))

    def run(single_buffer_weights):
        fixed = weight_bytes if single_buffer_weights else 2 * weight_bytes
        if batch_tile is not None:
            TB = batch_tile
        else:
            TB = _choose_batch_tile(B, row_slab, extra_row, fixed, budget)
            # Keep >= 2 grid steps (when B allows) so the "parallel" batch axis
            # can be split across v7x's two TensorCores on this mem-bound kernel.
            if B >= 16:
                TB = min(TB, max(8, _round_up(pl.cdiv(B, 2), 8)))
        grid = (pl.cdiv(B, TB),)

        wkw = {"pipeline_mode": pl.Buffered(1)} if single_buffer_weights else {}
        in_specs = [
            pl.BlockSpec(block_of(TB), lambda b: (b, 0, 0)),        # batch-tiled feat
            pl.BlockSpec((C, Hp), lambda b: (0, 0), **wkw),         # constant weights
            pl.BlockSpec((1, Hp), lambda b: (0, 0), **wkw),
            pl.BlockSpec((Hp, Np), lambda b: (0, 0), **wkw),
            pl.BlockSpec((1, Np), lambda b: (0, 0), **wkw),
        ]
        cost = pl.CostEstimate(
            flops=2 * B * C * Hp + 2 * B * Hp * Np + B * C * S,
            transcendentals=0,
            bytes_accessed=int(x.size) * it + weight_bytes + B * Np * 4,
        )
        return pl.pallas_call(
            functools.partial(onenet_head_kernel, pool_axis=pool_axis),
            out_shape=jax.ShapeDtypeStruct((B, Np), jnp.float32),
            grid_spec=pltpu.PrefetchScalarGridSpec(
                num_scalar_prefetch=0,
                grid=grid,
                in_specs=in_specs,
                out_specs=pl.BlockSpec((TB, Np), lambda b: (b, 0)),
            ),
            compiler_params=pltpu.CompilerParams(
                dimension_semantics=("parallel",),   # megacore split on v7x
                vmem_limit_bytes=vmem_limit,
            ),
            cost_estimate=cost,
        )(x, w1p, b1p, w2p, b2p)

    try:
        out_padded = run(True)
    except Exception:
        # pipeline_mode=pl.Buffered(1) not supported on this jax version:
        # fall back to default double-buffered weights (budgeted accordingly).
        out_padded = run(False)

    return out_padded[:, :classnum]


def init_params(key, last_c, classnum):
    """Deterministic PyTorch-Linear-style init (uniform +/- 1/sqrt(fan_in))."""
    hidden = last_c // 2
    k1, k2, k3, k4 = jax.random.split(key, 4)
    lim1 = 1.0 / jnp.sqrt(jnp.float32(last_c))
    lim2 = 1.0 / jnp.sqrt(jnp.float32(hidden))
    w1 = jax.random.uniform(k1, (last_c, hidden), jnp.float32, -lim1, lim1)
    b1 = jax.random.uniform(k2, (1, hidden), jnp.float32, -lim1, lim1)
    w2 = jax.random.uniform(k3, (hidden, classnum), jnp.float32, -lim2, lim2)
    b2 = jax.random.uniform(k4, (1, classnum), jnp.float32, -lim2, lim2)
    return w1, b1, w2, b2


if __name__ == "__main__":
    # Small shapes consistent with the module:
    #   B=2 batch, last_c=64 backbone channels, 8x8 spatial feature map, 10 classes.
    B, last_c, H, W = 2, 64, 8, 8
    classnum = 10

    key = jax.random.PRNGKey(0)
    k_feat, k_params = jax.random.split(key)

    feat_nchw = jax.random.normal(k_feat, (B, last_c, H, W), jnp.float32)  # NCHW
    w1, b1, w2, b2 = init_params(k_params, last_c, classnum)

    # Pure-JAX reference (eval-mode semantics: Dropout is identity).
    pooled_ref = jnp.mean(feat_nchw, axis=(2, 3))                    # [B, C]
    ref = jnp.maximum(pooled_ref @ w1 + b1, 0.0) @ w2 + b2

    # (a) exact-check path: f32 weights on the MXU, native NCHW features.
    params_f32 = prepare_onenet_head_params(w1, b1, w2, b2, H * W,
                                            mxu_dtype=jnp.float32)
    logits = base_one_net_head(feat_nchw, params_f32, layout="NCHW")
    jax.block_until_ready(logits)
    assert logits.shape == (B, classnum)
    assert jnp.allclose(logits, ref, atol=1e-5, rtol=1e-5)

    # (b) default path: one-time bf16 param prep + channels-last features
    #     (lane-dense DMA in C, pool on sublanes) — the recommended deployment.
    params = prepare_onenet_head_params(w1, b1, w2, b2, H * W)       # bf16 MXU
    feat_nhwc = jnp.transpose(feat_nchw, (0, 2, 3, 1))  # as an NHWC backbone would emit
    logits_nhwc = base_one_net_head(feat_nhwc, params, layout="NHWC")
    jax.block_until_ready(logits_nhwc)
    assert jnp.allclose(logits_nhwc, ref, atol=5e-2, rtol=5e-2)

    # (c) bf16 feature streaming on the NCHW path (halves feature HBM bytes).
    logits_bf16 = base_one_net_head(feat_nchw.astype(jnp.bfloat16), params,
                                    layout="NCHW")
    jax.block_until_ready(logits_bf16)
    assert jnp.allclose(logits_bf16, ref, atol=5e-2, rtol=5e-2)

    print("KERNEL_OK")
</pallas_src>

<mosaic_0001>
module attributes {stable_mosaic.version = 11 : i64} {
  func.func @onenet_head_kernel(%arg0: i32, %arg1: memref<2x64x64xf32, #tpu.memory_space<vmem>>, %arg2: memref<64x128xf32, #tpu.memory_space<vmem>>, %arg3: memref<1x128xf32, #tpu.memory_space<vmem>>, %arg4: memref<128x128xf32, #tpu.memory_space<vmem>>, %arg5: memref<1x128xf32, #tpu.memory_space<vmem>>, %arg6: memref<2x128xf32, #tpu.memory_space<vmem>>) attributes {dimension_semantics = [#tpu.dimension_semantics<parallel>], iteration_bounds = array<i64: 1>, scalar_prefetch = 0 : i64, scratch_operands = 0 : i64, tpu.core_type = #tpu.core_type<tc>, window_params = [{transform_indices = @transform_0, window_bounds = array<i64: 2, 64, 64>}, {pipeline_mode = #tpu.pipeline_mode<synchronous>, transform_indices = @transform_1, window_bounds = array<i64: 64, 128>}, {pipeline_mode = #tpu.pipeline_mode<synchronous>, transform_indices = @transform_2, window_bounds = array<i64: 1, 128>}, {pipeline_mode = #tpu.pipeline_mode<synchronous>, transform_indices = @transform_3, window_bounds = array<i64: 128, 128>}, {pipeline_mode = #tpu.pipeline_mode<synchronous>, transform_indices = @transform_4, window_bounds = array<i64: 1, 128>}, {transform_indices = @transform_5, window_bounds = array<i64: 2, 128>}]} {
    %c0 = arith.constant 0 : index
    %c0_0 = arith.constant 0 : index
    %c0_1 = arith.constant 0 : index
    %0 = vector.load %arg1[%c0, %c0_0, %c0_1] : memref<2x64x64xf32, #tpu.memory_space<vmem>>, vector<2x64x64xf32>
    %cst = arith.constant dense<0.000000e+00> : vector<2x64xf32>
    %1 = vector.multi_reduction <add>, %0, %cst [2] : vector<2x64x64xf32> to vector<2x64xf32>
    %c0_2 = arith.constant 0 : index
    %c0_3 = arith.constant 0 : index
    %2 = vector.load %arg2[%c0_2, %c0_3] : memref<64x128xf32, #tpu.memory_space<vmem>>, vector<64x128xf32>
    %cst_4 = arith.constant dense<0.000000e+00> : vector<2x128xf32>
    %3 = tpu.matmul %1, %2, %cst_4 {dimension_numbers = #tpu.dot_dimension_numbers<[1], [0], [0], [1], [0, 0, 1, 1], [], []>} : vector<2x64xf32>, vector<64x128xf32>, vector<2x128xf32> -> vector<2x128xf32>
    %c0_5 = arith.constant 0 : index
    %c0_6 = arith.constant 0 : index
    %4 = vector.load %arg3[%c0_5, %c0_6] : memref<1x128xf32, #tpu.memory_space<vmem>>, vector<1x128xf32>
    %5 = vector.broadcast %4 : vector<1x128xf32> to vector<2x128xf32>
    %6 = arith.addf %3, %5 : vector<2x128xf32>
    %cst_7 = arith.constant 0.000000e+00 : f32
    %7 = vector.broadcast %cst_7 : f32 to vector<2x128xf32>
    %8 = arith.maximumf %6, %7 : vector<2x128xf32>
    %c0_8 = arith.constant 0 : index
    %c0_9 = arith.constant 0 : index
    %9 = vector.load %arg4[%c0_8, %c0_9] : memref<128x128xf32, #tpu.memory_space<vmem>>, vector<128x128xf32>
    %cst_10 = arith.constant dense<0.000000e+00> : vector<2x128xf32>
    %10 = tpu.matmul %8, %9, %cst_10 {dimension_numbers = #tpu.dot_dimension_numbers<[1], [0], [0], [1], [0, 0, 1, 1], [], []>} : vector<2x128xf32>, vector<128x128xf32>, vector<2x128xf32> -> vector<2x128xf32>
    %c0_11 = arith.constant 0 : index
    %c0_12 = arith.constant 0 : index
    %11 = vector.load %arg5[%c0_11, %c0_12] : memref<1x128xf32, #tpu.memory_space<vmem>>, vector<1x128xf32>
    %12 = vector.broadcast %11 : vector<1x128xf32> to vector<2x128xf32>
    %13 = arith.addf %10, %12 : vector<2x128xf32>
    %c0_13 = arith.constant 0 : index
    %c0_14 = arith.constant 0 : index
    %14 = vector.load %arg6[%c0_13, %c0_14] : memref<2x128xf32, #tpu.memory_space<vmem>>, vector<2x128xf32>
    tpu.vector_store %arg6[%c0_13, %c0_14], %13 {strides = array<i32>} : memref<2x128xf32, #tpu.memory_space<vmem>>, vector<2x128xf32>,
    return
  }
  func.func @transform_0(%arg0: i32) -> (i32, i32, i32) {
    %c0_i32 = arith.constant 0 : i32
    %c0_i32_0 = arith.constant 0 : i32
    %c0_i32_1 = arith.constant 0 : i32
    return %arg0, %c0_i32, %c0_i32_0 : i32, i32, i32
  }
  func.func @transform_1(%arg0: i32) -> (i32, i32) {
    %c0_i32 = arith.constant 0 : i32
    %c0_i32_0 = arith.constant 0 : i32
    %c0_i32_1 = arith.constant 0 : i32
    return %c0_i32, %c0_i32_0 : i32, i32
  }
  func.func @transform_2(%arg0: i32) -> (i32, i32) {
    %c0_i32 = arith.constant 0 : i32
    %c0_i32_0 = arith.constant 0 : i32
    %c0_i32_1 = arith.constant 0 : i32
    return %c0_i32, %c0_i32_0 : i32, i32
  }
  func.func @transform_3(%arg0: i32) -> (i32, i32) {
    %c0_i32 = arith.constant 0 : i32
    %c0_i32_0 = arith.constant 0 : i32
    %c0_i32_1 = arith.constant 0 : i32
    return %c0_i32, %c0_i32_0 : i32, i32
  }
  func.func @transform_4(%arg0: i32) -> (i32, i32) {
    %c0_i32 = arith.constant 0 : i32
    %c0_i32_0 = arith.constant 0 : i32
    %c0_i32_1 = arith.constant 0 : i32
    return %c0_i32, %c0_i32_0 : i32, i32
  }
  func.func @transform_5(%arg0: i32) -> (i32, i32) {
    %c0_i32 = arith.constant 0 : i32
    %c0_i32_0 = arith.constant 0 : i32
    return %arg0, %c0_i32 : i32, i32
  }
}

module attributes {stable_mosaic.version = 11 : i64} {
  func.func @onenet_head_kernel(%arg0: i32, %arg1: memref<2x64x64xf32, #tpu.memory_space<vmem>>, %arg2: memref<64x128xf32, #tpu.memory_space<vmem>>, %arg3: memref<1x128xf32, #tpu.memory_space<vmem>>, %arg4: memref<128x128xf32, #tpu.memory_space<vmem>>, %arg5: memref<1x128xf32, #tpu.memory_space<vmem>>, %arg6: memref<2x128xf32, #tpu.memory_space<vmem>>) attributes {dimension_semantics = [#tpu.dimension_semantics<parallel>], iteration_bounds = array<i64: 1>, scalar_prefetch = 0 : i64, scratch_operands = 0 : i64, tpu.core_type = #tpu.core_type<tc>, window_params = [{transform_indices = @transform_0, window_bounds = array<i64: 2, 64, 64>}, {pipeline_mode = #tpu.pipeline_mode<synchronous>, transform_indices = @transform_1, window_bounds = array<i64: 64, 128>}, {pipeline_mode = #tpu.pipeline_mode<synchronous>, transform_indices = @transform_2, window_bounds = array<i64: 1, 128>}, {pipeline_mode = #tpu.pipeline_mode<synchronous>, transform_indices = @transform_3, window_bounds = array<i64: 128, 128>}, {pipeline_mode = #tpu.pipeline_mode<synchronous>, transform_indices = @transform_4, window_bounds = array<i64: 1, 128>}, {transform_indices = @transform_5, window_bounds = array<i64: 2, 128>}]} {
    %c0 = arith.constant 0 : index
    %c0_0 = arith.constant 0 : index
    %c0_1 = arith.constant 0 : index
    %0 = vector.load %arg1[%c0, %c0_0, %c0_1] : memref<2x64x64xf32, #tpu.memory_space<vmem>>, vector<2x64x64xf32>
    %cst = arith.constant dense<0.000000e+00> : vector<2x64xf32>
    %1 = vector.multi_reduction <add>, %0, %cst [2] : vector<2x64x64xf32> to vector<2x64xf32>
    %c0_2 = arith.constant 0 : index
    %c0_3 = arith.constant 0 : index
    %2 = vector.load %arg2[%c0_2, %c0_3] : memref<64x128xf32, #tpu.memory_space<vmem>>, vector<64x128xf32>
    %cst_4 = arith.constant dense<0.000000e+00> : vector<2x128xf32>
    %3 = tpu.matmul %1, %2, %cst_4 {dimension_numbers = #tpu.dot_dimension_numbers<[1], [0], [0], [1], [0, 0, 1, 1], [], []>} : vector<2x64xf32>, vector<64x128xf32>, vector<2x128xf32> -> vector<2x128xf32>
    %c0_5 = arith.constant 0 : index
    %c0_6 = arith.constant 0 : index
    %4 = vector.load %arg3[%c0_5, %c0_6] : memref<1x128xf32, #tpu.memory_space<vmem>>, vector<1x128xf32>
    %5 = vector.broadcast %4 : vector<1x128xf32> to vector<2x128xf32>
    %6 = arith.addf %3, %5 : vector<2x128xf32>
    %cst_7 = arith.constant 0.000000e+00 : f32
    %7 = vector.broadcast %cst_7 : f32 to vector<2x128xf32>
    %8 = arith.maximumf %6, %7 : vector<2x128xf32>
    %c0_8 = arith.constant 0 : index
    %c0_9 = arith.constant 0 : index
    %9 = vector.load %arg4[%c0_8, %c0_9] : memref<128x128xf32, #tpu.memory_space<vmem>>, vector<128x128xf32>
    %cst_10 = arith.constant dense<0.000000e+00> : vector<2x128xf32>
    %10 = tpu.matmul %8, %9, %cst_10 {dimension_numbers = #tpu.dot_dimension_numbers<[1], [0], [0], [1], [0, 0, 1, 1], [], []>} : vector<2x128xf32>, vector<128x128xf32>, vector<2x128xf32> -> vector<2x128xf32>
    %c0_11 = arith.constant 0 : index
    %c0_12 = arith.constant 0 : index
    %11 = vector.load %arg5[%c0_11, %c0_12] : memref<1x128xf32, #tpu.memory_space<vmem>>, vector<1x128xf32>
    %12 = vector.broadcast %11 : vector<1x128xf32> to vector<2x128xf32>
    %13 = arith.addf %10, %12 : vector<2x128xf32>
    %c0_13 = arith.constant 0 : index
    %c0_14 = arith.constant 0 : index
    %14 = vector.load %arg6[%c0_13, %c0_14] : memref<2x128xf32, #tpu.memory_space<vmem>>, vector<2x128xf32>
    tpu.vector_store %arg6[%c0_13, %c0_14], %13 {strides = array<i32>} : memref<2x128xf32, #tpu.memory_space<vmem>>, vector<2x128xf32>,
    return
  }
  func.func @transform_0(%arg0: i32) -> (i32, i32, i32) {
    %c0_i32 = arith.constant 0 : i32
    %c0_i32_0 = arith.constant 0 : i32
    %c0_i32_1 = arith.constant 0 : i32
    return %arg0, %c0_i32, %c0_i32_0 : i32, i32, i32
  }
  func.func @transform_1(%arg0: i32) -> (i32, i32) {
    %c0_i32 = arith.constant 0 : i32
    %c0_i32_0 = arith.constant 0 : i32
    %c0_i32_1 = arith.constant 0 : i32
    return %c0_i32, %c0_i32_0 : i32, i32
  }
  func.func @transform_2(%arg0: i32) -> (i32, i32) {
    %c0_i32 = arith.constant 0 : i32
    %c0_i32_0 = arith.constant 0 : i32
    %c0_i32_1 = arith.constant 0 : i32
    return %c0_i32, %c0_i32_0 : i32, i32
  }
  func.func @transform_3(%arg0: i32) -> (i32, i32) {
    %c0_i32 = arith.constant 0 : i32
    %c0_i32_0 = arith.constant 0 : i32
    %c0_i32_1 = arith.constant 0 : i32
    return %c0_i32, %c0_i32_0 : i32, i32
  }
  func.func @transform_4(%arg0: i32) -> (i32, i32) {
    %c0_i32 = arith.constant 0 : i32
    %c0_i32_0 = arith.constant 0 : i32
    %c0_i32_1 = arith.constant 0 : i32
    return %c0_i32, %c0_i32_0 : i32, i32
  }
  func.func @transform_5(%arg0: i32) -> (i32, i32) {
    %c0_i32 = arith.constant 0 : i32
    %c0_i32_0 = arith.constant 0 : i32
    return %arg0, %c0_i32 : i32, i32
  }
}

</mosaic_0001>

<bundles_post_ra>
// kernel: tpu_custom_call.1
= control target key start
LH: loop header
LB: loop body
LE: loop exit
PB: predicated region body
PF: predicated region fallthrough
CT: control target
= control target key end

     0   :  { %10 = vsyncpa [#allocation3], 0  ;;  %s795_s0 = inlined_call_operand.hbm [shape: f32[2,64,64], index: 0, kind: input, shape index: {}]   ;;  %s796_s1 = inlined_call_operand.hbm [shape: f32[64,128], index: 1, kind: input, shape index: {}]   ;;  %s797_s2 = inlined_call_operand.vmem [shape: f32[1,128], index: 2, kind: input, shape index: {}]   ;;  %s798_s3 = inlined_call_operand.hbm [shape: f32[128,128], index: 3, kind: input, shape index: {}]   ;;  %s799_s4 = inlined_call_operand.vmem [shape: f32[1,128], index: 4, kind: input, shape index: {}]   ;;  %s800_s5 = inlined_call_operand.hbm [shape: f32[2,128], index: 5, kind: output, shape index: {}]  }
   0x1   :  { %11 = vsyncpa [#allocation6], 0 }
   0x2   :  { %12 = vsyncpa [#allocation4], 0  ;;  %s659_s18 = smov [#allocation5]   ;;  %s660_s20 = smov [#allocation2]  }
   0x3   :  { %s30_s19 = sshll.u32 %s659_s18, 4  ;;  %s18_s21 = sshll.u32 %s660_s20, 4  ;;  %s31_s19 = int_to_ptr.vmem [resolvable:$true] %s30_s19  ;;  %s698_s21 = int_to_ptr.vmem [resolvable:$true] %s18_s21 }
   0x4   :  { %s565_s24 = scalar_lea.hbm %s796_s1, 1024 }
   0x5   :  { %p566_p0 = scmp.ne.s32.totalorder %s796_s1, %s565_s24  ;;  %p569_p1 = scmp.lt.u32.totalorder %s565_s24, %s796_s1 }
   0x7   :  { %p571_p2 = pnand %p569_p1, %p566_p0 }
   0x9   :  { %574 = shalt.err (!%p571_p2)
}
   0xa   :  { %s575_s29 = scalar_lea.vmem %s31_s19, 1024  ;;  %p580_p4 = scmp.lt.s32.totalorder %s31_s19, %s31_s19 }
   0xb   :  { %p576_p3 = scmp.ne.s32.totalorder %s31_s19, %s575_s29  ;;  %p581_p5 = scmp.lt.s32.totalorder %s575_s29, %s575_s29 }
   0xd   :  { %p582_p6 = por %p581_p5, %p580_p4 }
   0xf   :  { %p583_p7 = pnand %p582_p6, %p576_p3 }
  0x11   :  { %586 = shalt.err (!%p583_p7)
}
  0x12   :  { %s661_s30 = smov 128   ;;  %s662_s6 = smov 8  }
  0x13   :  { %36 = dma.hbm_to_vmem [thread:$0]  %s796_s1, 1024, %s31_s19, [#allocation6], %s661_s30, %s661_s30, %s662_s6  }
  0x14   :  { %s587_s11 = scalar_lea.hbm %s795_s0, 2048 }
  0x15   :  { %p588_p8 = scmp.ne.s32.totalorder %s795_s0, %s587_s11  ;;  %p591_p9 = scmp.lt.u32.totalorder %s587_s11, %s795_s0 }
  0x17   :  { %p593_p10 = pnand %p591_p9, %p588_p8 }
  0x19   :  { %596 = shalt.err (!%p593_p10)
}
  0x1a   :  { %s597_s16 = scalar_lea.vmem %s698_s21, 2048  ;;  %p602_p12 = scmp.lt.s32.totalorder %s698_s21, %s698_s21 }
  0x1b   :  { %p598_p11 = scmp.ne.s32.totalorder %s698_s21, %s597_s16  ;;  %p603_p13 = scmp.lt.s32.totalorder %s597_s16, %s597_s16 }
  0x1d   :  { %p604_p0 = por %p603_p13, %p602_p12 }
  0x1f   :  { %p605_p1 = pnand %p604_p0, %p598_p11 }
  0x21   :  { %608 = shalt.err (!%p605_p1)
}
  0x22   :  { %24 = dma.hbm_to_vmem [thread:$0]  %s795_s0, 2048, %s698_s21, [#allocation3], %s661_s30, %s661_s30, %s662_s6  }
  0x23   :  { %s663_s18 = smov [#allocation7]   ;;  %s609_s23 = scalar_lea.hbm %s798_s3, 2048 }
  0x24   :  { %s44_s19 = sshll.u32 %s663_s18, 4  ;;  %p610_p2 = scmp.ne.s32.totalorder %s798_s3, %s609_s23  ;;  %s45_s19 = int_to_ptr.vmem [resolvable:$true] %s44_s19 }
  0x25   :  { %p613_p3 = scmp.lt.u32.totalorder %s609_s23, %s798_s3 }
  0x27   :  { %p615_p4 = pnand %p613_p3, %p610_p2 }
  0x29   :  { %618 = shalt.err (!%p615_p4)
}
  0x2a   :  { %s619_s28 = scalar_lea.vmem %s45_s19, 2048  ;;  %p624_p6 = scmp.lt.s32.totalorder %s45_s19, %s45_s19 }
  0x2b   :  { %p620_p5 = scmp.ne.s32.totalorder %s45_s19, %s619_s28  ;;  %p625_p7 = scmp.lt.s32.totalorder %s619_s28, %s619_s28 }
  0x2d   :  { %p626_p8 = por %p625_p7, %p624_p6 }
  0x2f   :  { %p627_p9 = pnand %p626_p8, %p620_p5 }
  0x31   :  { %630 = shalt.err (!%p627_p9)
}
  0x32   :  { %50 = dma.hbm_to_vmem [thread:$0]  %s798_s3, 2048, %s45_s19, [#allocation6], %s661_s30, %s661_s30, %s662_s6  }
  0x33   :  { %653 = dma.done.wait [#allocation3], 2048  }
  0x34   :  { %654 = vsyncadd [#allocation3], 4294965248 }
  0x35   :  { %655 = dma.done.wait [#allocation6], 3072  }
  0x36   :  { %656 = vsyncadd [#allocation6], 4294964224  ;;  %vm78_vm0 = vcmask 523264   ;;  %v70_v0 = vld [vmem:[#allocation2 + $0x40] sm:$0xff]  ;;  %v71_v2 = vld [vmem:[#allocation2 + $0x48] sm:$0xff]  ;;  %v664_v35 = vmov 0.0|0.0  }
  0x37   :  { %v62_v1 = vld [vmem:[#allocation2] sm:$0xff]  ;;  %v103_v3 = vsel %vm78_vm0, %v70_v0, 0.0  ;;  %v63_v5 = vld [vmem:[#allocation2 + $0x8] sm:$0xff]  ;;  %v106_v6 = vsel %vm78_vm0, %v71_v2, 0.0  ;;  %v72_v8 = vld [vmem:[#allocation2 + $0x50] sm:$0xff]  ;;  %520 = vmatprep.subr.bf16.mxu0 %v664_v35  ;;  %532 = vmatprep.subr.bf16.mxu1 %v664_v35  ;;  %vm665_vm1 = vmmov 0  }
  0x38   :  { %v79_v4 = vsel %vm78_vm0, %v62_v1, 0.0  ;;  %104 = vadd.xlane.f32.xlu1 %v103_v3  ;;  %v82_v7 = vsel %vm78_vm0, %v63_v5, 0.0  ;;  %v64_v9 = vld [vmem:[#allocation2 + $0x10] sm:$0xff]  ;;  %v109_v10 = vsel %vm78_vm0, %v72_v8, 0.0  ;;  %v73_v12 = vld [vmem:[#allocation2 + $0x58] sm:$0xff]  ;;  %v74_v16 = vld [vmem:[#allocation2 + $0x60] sm:$0xff] }
  0x39   :  { %80 = vadd.xlane.f32.xlu0 %v79_v4  ;;  %v85_v11 = vsel %vm78_vm0, %v64_v9, 0.0  ;;  %v65_v13 = vld [vmem:[#allocation2 + $0x18] sm:$0xff]  ;;  %v112_v14 = vsel %vm78_vm0, %v73_v12, 0.0  ;;  %v66_v17 = vld [vmem:[#allocation2 + $0x20] sm:$0xff]  ;;  %v115_v18 = vsel %vm78_vm0, %v74_v16, 0.0  ;;  %v75_v20 = vld [vmem:[#allocation2 + $0x68] sm:$0xff] }
  0x3a   :  { %v88_v15 = vsel %vm78_vm0, %v65_v13, 0.0  ;;  %v91_v19 = vsel %vm78_vm0, %v66_v17, 0.0  ;;  %v67_v21 = vld [vmem:[#allocation2 + $0x28] sm:$0xff]  ;;  %v118_v22 = vsel %vm78_vm0, %v75_v20, 0.0  ;;  %v76_v24 = vld [vmem:[#allocation2 + $0x70] sm:$0xff]  ;;  %v77_v28 = vld [vmem:[#allocation2 + $0x78] sm:$0xff] }
  0x3b   :  { %v94_v23 = vsel %vm78_vm0, %v67_v21, 0.0  ;;  %v68_v25 = vld [vmem:[#allocation2 + $0x30] sm:$0xff]  ;;  %v121_v26 = vsel %vm78_vm0, %v76_v24, 0.0  ;;  %v69_v29 = vld [vmem:[#allocation2 + $0x38] sm:$0xff]  ;;  %v124_v30 = vsel %vm78_vm0, %v77_v28, 0.0  ;;  %v127_v32 = vld [vmem:[#allocation5] sm:$0xff] }
  0x3c   :  { %107 = vadd.xlane.f32.xlu1 %v106_v6  ;;  %v97_v27 = vsel %vm78_vm0, %v68_v25, 0.0  ;;  %v100_v31 = vsel %vm78_vm0, %v69_v29, 0.0  ;;  %v128_v33 = vld [vmem:[#allocation5 + $0x8] sm:$0xff]  ;;  %v129_v36 = vld [vmem:[#allocation5 + $0x10] sm:$0xff]  ;;  %v130_v37 = vld [vmem:[#allocation5 + $0x18] sm:$0xff]  ;;  %v666_v45 = vmov 0.0  }
  0x3d   :  { %83 = vadd.xlane.f32.xlu0 %v82_v7  ;;  %v521_v34 = vpack.c.bf16 %v128_v33, %v127_v32  ;;  %v524_v38 = vpack.c.bf16 %v130_v37, %v129_v36  ;;  %v131_v39 = vld [vmem:[#allocation5 + $0x20] sm:$0xff]  ;;  %v132_v40 = vld [vmem:[#allocation5 + $0x28] sm:$0xff]  ;;  %v133_v42 = vld [vmem:[#allocation5 + $0x30] sm:$0xff]  ;;  %482 = vmatprep.mubr.msk.f32.mxu0 %vm665_vm1, %v666_v45  ;;  %v158_v7 = vlaneseq  ;;  %vm169_vm2 = vcmask 130112   ;;  %s667_s7 = smov [#allocation8]  }
  0x3e   :  { %v527_v41 = vpack.c.bf16 %v132_v40, %v131_v39  ;;  %v134_v43 = vld [vmem:[#allocation5 + $0x38] sm:$0xff]  ;;  %517 = vmatprep.mubr.msk.f32.mxu1 %vm665_vm1, %v666_v45  ;;  %v327_v46 = vld [vmem:[#allocation7] sm:$0xff]  ;;  %v328_v47 = vld [vmem:[#allocation7 + $0x8] sm:$0xff]  ;;  %vm176_vm3 = vcmask 195712   ;;  %vm183_vm4 = vcmask 261312   ;;  %vm190_vm5 = vcmask 326912  }
  0x3f   :  { %522 = vmatpush3.bf16.msra.mxu0 %v521_v34  ;;  %v530_v44 = vpack.c.bf16 %v134_v43, %v133_v42  ;;  %v329_v48 = vld [vmem:[#allocation7 + $0x10] sm:$0xff]  ;;  %v533_v49 = vpack.c.bf16 %v328_v47, %v327_v46  ;;  %v330_v50 = vld [vmem:[#allocation7 + $0x18] sm:$0xff]  ;;  %v331_v52 = vld [vmem:[#allocation7 + $0x20] sm:$0xff]  ;;  %vm197_vm6 = vcmask 392512   ;;  %vm204_vm7 = vcmask 458112   ;;  %s427_s8 = sshll.u32 %s667_s7, 4  ;;  %s428_s8 = int_to_ptr.vmem [resolvable:$true] %s427_s8 }
  0x40   :  { %110 = vadd.xlane.f32.xlu1 %v109_v10  ;;  %523 = vmatprep.subr.bf16.mxu0 %v664_v35  ;;  %v536_v51 = vpack.c.bf16 %v330_v50, %v329_v48  ;;  %v332_v53 = vld [vmem:[#allocation7 + $0x28] sm:$0xff]  ;;  %v333_v55 = vld [vmem:[#allocation7 + $0x30] sm:$0xff]  ;;  %v334_v56 = vld [vmem:[#allocation7 + $0x38] sm:$0xff]  ;;  %v159_v10 = vand.u32 127, %v158_v7  ;;  %vm211_vm8 = vcmask 523712   ;;  %vm252_vm9 = vcmask 1041409   ;;  %p636_p11 = scmp.lt.s32.totalorder %s428_s8, %s428_s8 }
  0x41   :  { %86 = vadd.xlane.f32.xlu0 %v85_v11  ;;  %534 = vmatpush3.bf16.msra.mxu1 %v533_v49  ;;  %v539_v54 = vpack.c.bf16 %v332_v53, %v331_v52  ;;  %v542_v57 = vpack.c.bf16 %v334_v56, %v333_v55  ;;  %v335_v58 = vld [vmem:[#allocation7 + $0x40] sm:$0xff]  ;;  %v336_v59 = vld [vmem:[#allocation7 + $0x48] sm:$0xff]  ;;  %v337_v61 = vld [vmem:[#allocation7 + $0x50] sm:$0xff]  ;;  %s631_s9 = scalar_lea.vmem %s428_s8, 32 }
  0x42   :  { %535 = vmatprep.subr.bf16.mxu1 %v664_v35  ;;  %v545_v60 = vpack.c.bf16 %v336_v59, %v335_v58  ;;  %v338_v62 = vld [vmem:[#allocation7 + $0x58] sm:$0xff]  ;;  %v339_v0 = vld [vmem:[#allocation7 + $0x60] sm:$0xff]  ;;  %v340_v1 = vld [vmem:[#allocation7 + $0x68] sm:$0xff]  ;;  %v164_v13 = vadd.s32 4294967288, %v159_v10  ;;  %v178_v16 = vadd.s32 4294967272, %v159_v10  ;;  %v185_v17 = vadd.s32 4294967264, %v159_v10  ;;  %p632_p10 = scmp.ne.s32.totalorder %s428_s8, %s631_s9  ;;  %p637_p12 = scmp.lt.s32.totalorder %s631_s9, %s631_s9 }
  0x43   :  { %525 = vmatpush3.bf16.msra.mxu0 %v524_v38  ;;  %v548_v63 = vpack.c.bf16 %v338_v62, %v337_v61  ;;  %v551_v2 = vpack.c.bf16 %v340_v1, %v339_v0  ;;  %v192_v21 = vadd.s32 4294967256, %v159_v10  ;;  %v206_v29 = vadd.s32 4294967240, %v159_v10 }
  0x44   :  { %113 = vadd.xlane.f32.xlu1 %v112_v14  ;;  %526 = vmatprep.subr.bf16.mxu0 %v664_v35  ;;  %v171_v14 = vadd.s32 4294967280, %v159_v10  ;;  %p638_p13 = por %p637_p12, %p636_p11 }
  0x45   :  { %89 = vadd.xlane.f32.xlu0 %v88_v15  ;;  %537 = vmatpush3.bf16.msra.mxu1 %v536_v51  ;;  %v161_v15 = vshrl.u32 %v158_v7, 7  ;;  %v437_v7 = vld [vmem:[%s797_s2] ss:$0 sm:$0xff] }
  0x46   :  { %538 = vmatprep.subr.bf16.mxu1 %v664_v35  ;;  %p639_p0 = pnand %p638_p13, %p632_p10 }
  0x47   :  { %528 = vmatpush3.bf16.msra.mxu0 %v527_v41  ;;  %v167_v20 = vsub.s32 %v164_v13, %v161_v15  ;;  %v162_v24 = vsub.s32 %v159_v10, %v161_v15  ;;  %v181_v25 = vsub.s32 %v178_v16, %v161_v15  ;;  %v195_v32 = vsub.s32 %v192_v21, %v161_v15 }
  0x48   :  { %116 = vadd.xlane.f32.xlu1 %v115_v18  ;;  %529 = vmatprep.subr.bf16.mxu0 %v664_v35 }
  0x49   :  { %92 = vadd.xlane.f32.xlu0 %v91_v19  ;;  %540 = vmatpush3.bf16.msra.mxu1 %v539_v54 }
  0x4a   :  { %541 = vmatprep.subr.bf16.mxu1 %v664_v35 }
  0x4b   :  { %531 = vmatpush3.bf16.msra.mxu0 %v530_v44  ;;  %v209_v44 = vsub.s32 %v206_v29, %v161_v15 }
  0x4c   :  { %119 = vadd.xlane.f32.xlu1 %v118_v22  ;;  %v174_v22 = vsub.s32 %v171_v14, %v161_v15 }
  0x4d   :  { %95 = vadd.xlane.f32.xlu0 %v94_v23  ;;  %543 = vmatpush3.bf16.msra.mxu1 %v542_v57  ;;  %v199_v23 = vadd.s32 4294967248, %v159_v10 }
  0x4e   :  { %544 = vmatprep.subr.bf16.mxu1 %v664_v35 }
  0x50   :  { %122 = vadd.xlane.f32.xlu1 %v121_v26  ;;  %v188_v26 = vsub.s32 %v185_v17, %v161_v15 }
  0x51   :  { %98 = vadd.xlane.f32.xlu0 %v97_v27  ;;  %546 = vmatpush3.bf16.msra.mxu1 %v545_v60 }
  0x52   :  { %547 = vmatprep.subr.bf16.mxu1 %v664_v35 }
  0x54   :  { %125 = vadd.xlane.f32.xlu1 %v124_v30 }
  0x55   :  { %101 = vadd.xlane.f32.xlu0 %v100_v31  ;;  %549 = vmatpush3.bf16.msra.mxu1 %v548_v63 }
  0x56   :  { %550 = vmatprep.subr.bf16.mxu1 %v664_v35 }
  0x59   :  { %552 = vmatpush3.bf16.msra.mxu1 %v551_v2 }
  0x5a   :  { %553 = vmatprep.subr.bf16.mxu1 %v664_v35  ;;  %v202_v35 = vsub.s32 %v199_v23, %v161_v15 }
  0xc5   :  { %v105_v3 = vpop.xlane.xlu1 %104 }
  0xc6   :  { %v81_v4 = vpop.xlane.xlu0 %80  ;;  %v216_v36 = vrot.slane %v105_v3, %v162_v24 }
  0xc7   :  { %v163_v37 = vrot.slane %v81_v4, %v162_v24  ;;  %v341_v4 = vld [vmem:[#allocation7 + $0x70] sm:$0xff] }
  0xc9   :  { %v108_v5 = vpop.xlane.xlu1 %107 }
  0xca   :  { %v84_v6 = vpop.xlane.xlu0 %83  ;;  %v220_v30 = vrot.slane %v108_v5, %v167_v20  ;;  %v342_v5 = vld [vmem:[#allocation7 + $0x78] sm:$0xff] }
  0xcb   :  { %v168_v31 = vrot.slane %v84_v6, %v167_v20  ;;  %v554_v6 = vpack.c.bf16 %v342_v5, %v341_v4 }
  0xcc   :  { %v221_v45 = vsel %vm169_vm2, %v220_v30, %v216_v36 }
  0xcd   :  { %v111_v8 = vpop.xlane.xlu1 %110  ;;  %v170_v46 = vsel %vm169_vm2, %v168_v31, %v163_v37  ;;  %555 = vmatpush3.bf16.msra.mxu1 %v554_v6 }
  0xce   :  { %v87_v9 = vpop.xlane.xlu0 %86  ;;  %v225_v33 = vrot.slane %v111_v8, %v174_v22 }
  0xcf   :  { %v175_v34 = vrot.slane %v87_v9, %v174_v22 }
  0xd0   :  { %v226_v49 = vsel %vm176_vm3, %v225_v33, %v221_v45 }
  0xd1   :  { %v114_v11 = vpop.xlane.xlu1 %113  ;;  %v177_v50 = vsel %vm176_vm3, %v175_v34, %v170_v46 }
  0xd2   :  { %v90_v12 = vpop.xlane.xlu0 %89  ;;  %v230_v38 = vrot.slane %v114_v11, %v181_v25 }
  0xd3   :  { %v182_v39 = vrot.slane %v90_v12, %v181_v25  ;;  %v439_v12 = vld [vmem:[%s799_s4] ss:$0 sm:$0xff] }
  0xd4   :  { %v231_v53 = vsel %vm183_vm4, %v230_v38, %v226_v49 }
  0xd5   :  { %v117_v18 = vpop.xlane.xlu1 %116  ;;  %v184_v54 = vsel %vm183_vm4, %v182_v39, %v177_v50 }
  0xd6   :  { %v93_v19 = vpop.xlane.xlu0 %92  ;;  %v235_v40 = vrot.slane %v117_v18, %v188_v26 }
  0xd7   :  { %v189_v41 = vrot.slane %v93_v19, %v188_v26 }
  0xd8   :  { %v236_v55 = vsel %vm190_vm5, %v235_v40, %v231_v53 }
  0xd9   :  { %v120_v27 = vpop.xlane.xlu1 %119  ;;  %v191_v56 = vsel %vm190_vm5, %v189_v41, %v184_v54 }
  0xda   :  { %v96_v28 = vpop.xlane.xlu0 %95  ;;  %v240_v47 = vrot.slane %v120_v27, %v195_v32 }
  0xdb   :  { %v196_v48 = vrot.slane %v96_v28, %v195_v32 }
  0xdc   :  { %v241_v59 = vsel %vm197_vm6, %v240_v47, %v236_v55 }
  0xdd   :  { %v123_v42 = vpop.xlane.xlu1 %122  ;;  %v198_v60 = vsel %vm197_vm6, %v196_v48, %v191_v56 }
  0xde   :  { %v99_v43 = vpop.xlane.xlu0 %98  ;;  %v245_v51 = vrot.slane %v123_v42, %v202_v35 }
  0xdf   :  { %v203_v52 = vrot.slane %v99_v43, %v202_v35 }
  0xe0   :  { %v246_v63 = vsel %vm204_vm7, %v245_v51, %v241_v59 }
  0xe1   :  { %v126_v57 = vpop.xlane.xlu1 %125  ;;  %v205_v0 = vsel %vm204_vm7, %v203_v52, %v198_v60 }
  0xe2   :  { %v102_v58 = vpop.xlane.xlu0 %101  ;;  %v250_v61 = vrot.slane %v126_v57, %v209_v44 }
  0xe3   :  { %v210_v62 = vrot.slane %v102_v58, %v209_v44 }
  0xe4   :  { %v251_v1 = vsel %vm211_vm8, %v250_v61, %v246_v63 }
  0xe5   :  { %v212_v2 = vsel %vm211_vm8, %v210_v62, %v205_v0 }
  0xe6   :  { %v253_v3 = vsel %vm252_vm9, %v251_v1, %v212_v2 }
  0xe7   :  { %483 = vmatmul.mubr.msk.f32.vlgmr.msra.gmra.mrb[0].mxu0 %vm78_vm0, %v253_v3 }
 0x1ba   :  { %v322_v8 = vpop.f32.mrb[0].mxu0 }
 0x1bb   :  { %v323_v9 = vadd.f32 %v437_v7, %v322_v8  ;;  %v484_v10 = vpop.f32.mrb[1].mxu0 }
 0x1bd   :  { %v326_v11 = vmax.f32 %v323_v9, 0.0 }
 0x1bf   :  { %518 = vmatmul.mubr.f32.vlgmr.msra.gmra.mrb[0].mxu1 %v326_v11 }
 0x292   :  { %v416_v13 = vpop.f32.mrb[0].mxu1 }
 0x293   :  { %v417_v14 = vadd.f32 %v439_v12, %v416_v13  ;;  %v519_v15 = vpop.f32.mrb[1].mxu1 }
 0x295   :  { %420 = vst [vmem:[#allocation8] sm:$0x3] %v417_v14 }
 0x296   :  { %642 = shalt.err (!%p639_p0)
}
 0x297   :  { %s643_s11 = scalar_lea.hbm %s800_s5, 32 }
 0x298   :  { %p644_p1 = scmp.ne.s32.totalorder %s800_s5, %s643_s11  ;;  %p647_p2 = scmp.lt.u32.totalorder %s643_s11, %s800_s5 }
 0x29a   :  { %p649_p3 = pnand %p647_p2, %p644_p1 }
 0x29c   :  { %652 = shalt.err (!%p649_p3)
}
 0x29d   :  { %430 = dma.vmem_to_hbm [thread:$0]  %s428_s8, 32, %s800_s5, [#allocation4]  }
 0x29e   :  { %657 = dma.done.wait [#allocation4], 32  }
 0x29f   :  { %658 = vsyncadd [#allocation4], 4294967264 }
 0x2a0   :  { %434 = vsyncpa [#allocation3], 1 }
 0x2a1   :  { %435 = vsyncpa [#allocation6], 1 }
 0x2a2   :  { %436 = vsyncpa [#allocation4], 1 }

// kernel: tpu_custom_call.1
= control target key start
LH: loop header
LB: loop body
LE: loop exit
PB: predicated region body
PF: predicated region fallthrough
CT: control target
= control target key end

     0   :  { %10 = vsyncpa [#allocation3], 0  ;;  %s795_s0 = inlined_call_operand.hbm [shape: f32[2,64,64], index: 0, kind: input, shape index: {}]   ;;  %s796_s1 = inlined_call_operand.hbm [shape: f32[64,128], index: 1, kind: input, shape index: {}]   ;;  %s797_s2 = inlined_call_operand.vmem [shape: f32[1,128], index: 2, kind: input, shape index: {}]   ;;  %s798_s3 = inlined_call_operand.hbm [shape: f32[128,128], index: 3, kind: input, shape index: {}]   ;;  %s799_s4 = inlined_call_operand.vmem [shape: f32[1,128], index: 4, kind: input, shape index: {}]   ;;  %s800_s5 = inlined_call_operand.hbm [shape: f32[2,128], index: 5, kind: output, shape index: {}]  }
   0x1   :  { %11 = vsyncpa [#allocation6], 0 }
   0x2   :  { %12 = vsyncpa [#allocation4], 0  ;;  %s659_s18 = smov [#allocation5]   ;;  %s660_s20 = smov [#allocation2]  }
   0x3   :  { %s30_s19 = sshll.u32 %s659_s18, 4  ;;  %s18_s21 = sshll.u32 %s660_s20, 4  ;;  %s31_s19 = int_to_ptr.vmem [resolvable:$true] %s30_s19  ;;  %s698_s21 = int_to_ptr.vmem [resolvable:$true] %s18_s21 }
   0x4   :  { %s565_s24 = scalar_lea.hbm %s796_s1, 1024 }
   0x5   :  { %p566_p0 = scmp.ne.s32.totalorder %s796_s1, %s565_s24  ;;  %p569_p1 = scmp.lt.u32.totalorder %s565_s24, %s796_s1 }
   0x7   :  { %p571_p2 = pnand %p569_p1, %p566_p0 }
   0x9   :  { %574 = shalt.err (!%p571_p2)
}
   0xa   :  { %s575_s29 = scalar_lea.vmem %s31_s19, 1024  ;;  %p580_p4 = scmp.lt.s32.totalorder %s31_s19, %s31_s19 }
   0xb   :  { %p576_p3 = scmp.ne.s32.totalorder %s31_s19, %s575_s29  ;;  %p581_p5 = scmp.lt.s32.totalorder %s575_s29, %s575_s29 }
   0xd   :  { %p582_p6 = por %p581_p5, %p580_p4 }
   0xf   :  { %p583_p7 = pnand %p582_p6, %p576_p3 }
  0x11   :  { %586 = shalt.err (!%p583_p7)
}
  0x12   :  { %s661_s30 = smov 128   ;;  %s662_s6 = smov 8  }
  0x13   :  { %36 = dma.hbm_to_vmem [thread:$0]  %s796_s1, 1024, %s31_s19, [#allocation6], %s661_s30, %s661_s30, %s662_s6  }
  0x14   :  { %s587_s11 = scalar_lea.hbm %s795_s0, 2048 }
  0x15   :  { %p588_p8 = scmp.ne.s32.totalorder %s795_s0, %s587_s11  ;;  %p591_p9 = scmp.lt.u32.totalorder %s587_s11, %s795_s0 }
  0x17   :  { %p593_p10 = pnand %p591_p9, %p588_p8 }
  0x19   :  { %596 = shalt.err (!%p593_p10)
}
  0x1a   :  { %s597_s16 = scalar_lea.vmem %s698_s21, 2048  ;;  %p602_p12 = scmp.lt.s32.totalorder %s698_s21, %s698_s21 }
  0x1b   :  { %p598_p11 = scmp.ne.s32.totalorder %s698_s21, %s597_s16  ;;  %p603_p13 = scmp.lt.s32.totalorder %s597_s16, %s597_s16 }
  0x1d   :  { %p604_p0 = por %p603_p13, %p602_p12 }
  0x1f   :  { %p605_p1 = pnand %p604_p0, %p598_p11 }
  0x21   :  { %608 = shalt.err (!%p605_p1)
}
  0x22   :  { %24 = dma.hbm_to_vmem [thread:$0]  %s795_s0, 2048, %s698_s21, [#allocation3], %s661_s30, %s661_s30, %s662_s6  }
  0x23   :  { %s663_s18 = smov [#allocation7]   ;;  %s609_s23 = scalar_lea.hbm %s798_s3, 2048 }
  0x24   :  { %s44_s19 = sshll.u32 %s663_s18, 4  ;;  %p610_p2 = scmp.ne.s32.totalorder %s798_s3, %s609_s23  ;;  %s45_s19 = int_to_ptr.vmem [resolvable:$true] %s44_s19 }
  0x25   :  { %p613_p3 = scmp.lt.u32.totalorder %s609_s23, %s798_s3 }
  0x27   :  { %p615_p4 = pnand %p613_p3, %p610_p2 }
  0x29   :  { %618 = shalt.err (!%p615_p4)
}
  0x2a   :  { %s619_s28 = scalar_lea.vmem %s45_s19, 2048  ;;  %p624_p6 = scmp.lt.s32.totalorder %s45_s19, %s45_s19 }
  0x2b   :  { %p620_p5 = scmp.ne.s32.totalorder %s45_s19, %s619_s28  ;;  %p625_p7 = scmp.lt.s32.totalorder %s619_s28, %s619_s28 }
  0x2d   :  { %p626_p8 = por %p625_p7, %p624_p6 }
  0x2f   :  { %p627_p9 = pnand %p626_p8, %p620_p5 }
  0x31   :  { %630 = shalt.err (!%p627_p9)
}
  0x32   :  { %50 = dma.hbm_to_vmem [thread:$0]  %s798_s3, 2048, %s45_s19, [#allocation6], %s661_s30, %s661_s30, %s662_s6  }
  0x33   :  { %653 = dma.done.wait [#allocation3], 2048  }
  0x34   :  { %654 = vsyncadd [#allocation3], 4294965248 }
  0x35   :  { %655 = dma.done.wait [#allocation6], 3072  }
  0x36   :  { %656 = vsyncadd [#allocation6], 4294964224  ;;  %vm78_vm0 = vcmask 523264   ;;  %v70_v0 = vld [vmem:[#allocation2 + $0x40] sm:$0xff]  ;;  %v71_v2 = vld [vmem:[#allocation2 + $0x48] sm:$0xff]  ;;  %v664_v35 = vmov 0.0|0.0  }
  0x37   :  { %v62_v1 = vld [vmem:[#allocation2] sm:$0xff]  ;;  %v103_v3 = vsel %vm78_vm0, %v70_v0, 0.0  ;;  %v63_v5 = vld [vmem:[#allocation2 + $0x8] sm:$0xff]  ;;  %v106_v6 = vsel %vm78_vm0, %v71_v2, 0.0  ;;  %v72_v8 = vld [vmem:[#allocation2 + $0x50] sm:$0xff]  ;;  %520 = vmatprep.subr.bf16.mxu0 %v664_v35  ;;  %532 = vmatprep.subr.bf16.mxu1 %v664_v35  ;;  %vm665_vm1 = vmmov 0  }
  0x38   :  { %v79_v4 = vsel %vm78_vm0, %v62_v1, 0.0  ;;  %104 = vadd.xlane.f32.xlu1 %v103_v3  ;;  %v82_v7 = vsel %vm78_vm0, %v63_v5, 0.0  ;;  %v64_v9 = vld [vmem:[#allocation2 + $0x10] sm:$0xff]  ;;  %v109_v10 = vsel %vm78_vm0, %v72_v8, 0.0  ;;  %v73_v12 = vld [vmem:[#allocation2 + $0x58] sm:$0xff]  ;;  %v74_v16 = vld [vmem:[#allocation2 + $0x60] sm:$0xff] }
  0x39   :  { %80 = vadd.xlane.f32.xlu0 %v79_v4  ;;  %v85_v11 = vsel %vm78_vm0, %v64_v9, 0.0  ;;  %v65_v13 = vld [vmem:[#allocation2 + $0x18] sm:$0xff]  ;;  %v112_v14 = vsel %vm78_vm0, %v73_v12, 0.0  ;;  %v66_v17 = vld [vmem:[#allocation2 + $0x20] sm:$0xff]  ;;  %v115_v18 = vsel %vm78_vm0, %v74_v16, 0.0  ;;  %v75_v20 = vld [vmem:[#allocation2 + $0x68] sm:$0xff] }
  0x3a   :  { %v88_v15 = vsel %vm78_vm0, %v65_v13, 0.0  ;;  %v91_v19 = vsel %vm78_vm0, %v66_v17, 0.0  ;;  %v67_v21 = vld [vmem:[#allocation2 + $0x28] sm:$0xff]  ;;  %v118_v22 = vsel %vm78_vm0, %v75_v20, 0.0  ;;  %v76_v24 = vld [vmem:[#allocation2 + $0x70] sm:$0xff]  ;;  %v77_v28 = vld [vmem:[#allocation2 + $0x78] sm:$0xff] }
  0x3b   :  { %v94_v23 = vsel %vm78_vm0, %v67_v21, 0.0  ;;  %v68_v25 = vld [vmem:[#allocation2 + $0x30] sm:$0xff]  ;;  %v121_v26 = vsel %vm78_vm0, %v76_v24, 0.0  ;;  %v69_v29 = vld [vmem:[#allocation2 + $0x38] sm:$0xff]  ;;  %v124_v30 = vsel %vm78_vm0, %v77_v28, 0.0  ;;  %v127_v32 = vld [vmem:[#allocation5] sm:$0xff] }
  0x3c   :  { %107 = vadd.xlane.f32.xlu1 %v106_v6  ;;  %v97_v27 = vsel %vm78_vm0, %v68_v25, 0.0  ;;  %v100_v31 = vsel %vm78_vm0, %v69_v29, 0.0  ;;  %v128_v33 = vld [vmem:[#allocation5 + $0x8] sm:$0xff]  ;;  %v129_v36 = vld [vmem:[#allocation5 + $0x10] sm:$0xff]  ;;  %v130_v37 = vld [vmem:[#allocation5 + $0x18] sm:$0xff]  ;;  %v666_v45 = vmov 0.0  }
  0x3d   :  { %83 = vadd.xlane.f32.xlu0 %v82_v7  ;;  %v521_v34 = vpack.c.bf16 %v128_v33, %v127_v32  ;;  %v524_v38 = vpack.c.bf16 %v130_v37, %v129_v36  ;;  %v131_v39 = vld [vmem:[#allocation5 + $0x20] sm:$0xff]  ;;  %v132_v40 = vld [vmem:[#allocation5 + $0x28] sm:$0xff]  ;;  %v133_v42 = vld [vmem:[#allocation5 + $0x30] sm:$0xff]  ;;  %482 = vmatprep.mubr.msk.f32.mxu0 %vm665_vm1, %v666_v45  ;;  %v158_v7 = vlaneseq  ;;  %vm169_vm2 = vcmask 130112   ;;  %s667_s7 = smov [#allocation8]  }
  0x3e   :  { %v527_v41 = vpack.c.bf16 %v132_v40, %v131_v39  ;;  %v134_v43 = vld [vmem:[#allocation5 + $0x38] sm:$0xff]  ;;  %517 = vmatprep.mubr.msk.f32.mxu1 %vm665_vm1, %v666_v45  ;;  %v327_v46 = vld [vmem:[#allocation7] sm:$0xff]  ;;  %v328_v47 = vld [vmem:[#allocation7 + $0x8] sm:$0xff]  ;;  %vm176_vm3 = vcmask 195712   ;;  %vm183_vm4 = vcmask 261312   ;;  %vm190_vm5 = vcmask 326912  }
  0x3f   :  { %522 = vmatpush3.bf16.msra.mxu0 %v521_v34  ;;  %v530_v44 = vpack.c.bf16 %v134_v43, %v133_v42  ;;  %v329_v48 = vld [vmem:[#allocation7 + $0x10] sm:$0xff]  ;;  %v533_v49 = vpack.c.bf16 %v328_v47, %v327_v46  ;;  %v330_v50 = vld [vmem:[#allocation7 + $0x18] sm:$0xff]  ;;  %v331_v52 = vld [vmem:[#allocation7 + $0x20] sm:$0xff]  ;;  %vm197_vm6 = vcmask 392512   ;;  %vm204_vm7 = vcmask 458112   ;;  %s427_s8 = sshll.u32 %s667_s7, 4  ;;  %s428_s8 = int_to_ptr.vmem [resolvable:$true] %s427_s8 }
  0x40   :  { %110 = vadd.xlane.f32.xlu1 %v109_v10  ;;  %523 = vmatprep.subr.bf16.mxu0 %v664_v35  ;;  %v536_v51 = vpack.c.bf16 %v330_v50, %v329_v48  ;;  %v332_v53 = vld [vmem:[#allocation7 + $0x28] sm:$0xff]  ;;  %v333_v55 = vld [vmem:[#allocation7 + $0x30] sm:$0xff]  ;;  %v334_v56 = vld [vmem:[#allocation7 + $0x38] sm:$0xff]  ;;  %v159_v10 = vand.u32 127, %v158_v7  ;;  %vm211_vm8 = vcmask 523712   ;;  %vm252_vm9 = vcmask 1041409   ;;  %p636_p11 = scmp.lt.s32.totalorder %s428_s8, %s428_s8 }
  0x41   :  { %86 = vadd.xlane.f32.xlu0 %v85_v11  ;;  %534 = vmatpush3.bf16.msra.mxu1 %v533_v49  ;;  %v539_v54 = vpack.c.bf16 %v332_v53, %v331_v52  ;;  %v542_v57 = vpack.c.bf16 %v334_v56, %v333_v55  ;;  %v335_v58 = vld [vmem:[#allocation7 + $0x40] sm:$0xff]  ;;  %v336_v59 = vld [vmem:[#allocation7 + $0x48] sm:$0xff]  ;;  %v337_v61 = vld [vmem:[#allocation7 + $0x50] sm:$0xff]  ;;  %s631_s9 = scalar_lea.vmem %s428_s8, 32 }
  0x42   :  { %535 = vmatprep.subr.bf16.mxu1 %v664_v35  ;;  %v545_v60 = vpack.c.bf16 %v336_v59, %v335_v58  ;;  %v338_v62 = vld [vmem:[#allocation7 + $0x58] sm:$0xff]  ;;  %v339_v0 = vld [vmem:[#allocation7 + $0x60] sm:$0xff]  ;;  %v340_v1 = vld [vmem:[#allocation7 + $0x68] sm:$0xff]  ;;  %v164_v13 = vadd.s32 4294967288, %v159_v10  ;;  %v178_v16 = vadd.s32 4294967272, %v159_v10  ;;  %v185_v17 = vadd.s32 4294967264, %v159_v10  ;;  %p632_p10 = scmp.ne.s32.totalorder %s428_s8, %s631_s9  ;;  %p637_p12 = scmp.lt.s32.totalorder %s631_s9, %s631_s9 }
  0x43   :  { %525 = vmatpush3.bf16.msra.mxu0 %v524_v38  ;;  %v548_v63 = vpack.c.bf16 %v338_v62, %v337_v61  ;;  %v551_v2 = vpack.c.bf16 %v340_v1, %v339_v0  ;;  %v192_v21 = vadd.s32 4294967256, %v159_v10  ;;  %v206_v29 = vadd.s32 4294967240, %v159_v10 }
  0x44   :  { %113 = vadd.xlane.f32.xlu1 %v112_v14  ;;  %526 = vmatprep.subr.bf16.mxu0 %v664_v35  ;;  %v171_v14 = vadd.s32 4294967280, %v159_v10  ;;  %p638_p13 = por %p637_p12, %p636_p11 }
  0x45   :  { %89 = vadd.xlane.f32.xlu0 %v88_v15  ;;  %537 = vmatpush3.bf16.msra.mxu1 %v536_v51  ;;  %v161_v15 = vshrl.u32 %v158_v7, 7  ;;  %v437_v7 = vld [vmem:[%s797_s2] ss:$0 sm:$0xff] }
  0x46   :  { %538 = vmatprep.subr.bf16.mxu1 %v664_v35  ;;  %p639_p0 = pnand %p638_p13, %p632_p10 }
  0x47   :  { %528 = vmatpush3.bf16.msra.mxu0 %v527_v41  ;;  %v167_v20 = vsub.s32 %v164_v13, %v161_v15  ;;  %v162_v24 = vsub.s32 %v159_v10, %v161_v15  ;;  %v181_v25 = vsub.s32 %v178_v16, %v161_v15  ;;  %v195_v32 = vsub.s32 %v192_v21, %v161_v15 }
  0x48   :  { %116 = vadd.xlane.f32.xlu1 %v115_v18  ;;  %529 = vmatprep.subr.bf16.mxu0 %v664_v35 }
  0x49   :  { %92 = vadd.xlane.f32.xlu0 %v91_v19  ;;  %540 = vmatpush3.bf16.msra.mxu1 %v539_v54 }
  0x4a   :  { %541 = vmatprep.subr.bf16.mxu1 %v664_v35 }
  0x4b   :  { %531 = vmatpush3.bf16.msra.mxu0 %v530_v44  ;;  %v209_v44 = vsub.s32 %v206_v29, %v161_v15 }
  0x4c   :  { %119 = vadd.xlane.f32.xlu1 %v118_v22  ;;  %v174_v22 = vsub.s32 %v171_v14, %v161_v15 }
  0x4d   :  { %95 = vadd.xlane.f32.xlu0 %v94_v23  ;;  %543 = vmatpush3.bf16.msra.mxu1 %v542_v57  ;;  %v199_v23 = vadd.s32 4294967248, %v159_v10 }
  0x4e   :  { %544 = vmatprep.subr.bf16.mxu1 %v664_v35 }
  0x50   :  { %122 = vadd.xlane.f32.xlu1 %v121_v26  ;;  %v188_v26 = vsub.s32 %v185_v17, %v161_v15 }
  0x51   :  { %98 = vadd.xlane.f32.xlu0 %v97_v27  ;;  %546 = vmatpush3.bf16.msra.mxu1 %v545_v60 }
  0x52   :  { %547 = vmatprep.subr.bf16.mxu1 %v664_v35 }
  0x54   :  { %125 = vadd.xlane.f32.xlu1 %v124_v30 }
  0x55   :  { %101 = vadd.xlane.f32.xlu0 %v100_v31  ;;  %549 = vmatpush3.bf16.msra.mxu1 %v548_v63 }
  0x56   :  { %550 = vmatprep.subr.bf16.mxu1 %v664_v35 }
  0x59   :  { %552 = vmatpush3.bf16.msra.mxu1 %v551_v2 }
  0x5a   :  { %553 = vmatprep.subr.bf16.mxu1 %v664_v35  ;;  %v202_v35 = vsub.s32 %v199_v23, %v161_v15 }
  0xc5   :  { %v105_v3 = vpop.xlane.xlu1 %104 }
  0xc6   :  { %v81_v4 = vpop.xlane.xlu0 %80  ;;  %v216_v36 = vrot.slane %v105_v3, %v162_v24 }
  0xc7   :  { %v163_v37 = vrot.slane %v81_v4, %v162_v24  ;;  %v341_v4 = vld [vmem:[#allocation7 + $0x70] sm:$0xff] }
  0xc9   :  { %v108_v5 = vpop.xlane.xlu1 %107 }
  0xca   :  { %v84_v6 = vpop.xlane.xlu0 %83  ;;  %v220_v30 = vrot.slane %v108_v5, %v167_v20  ;;  %v342_v5 = vld [vmem:[#allocation7 + $0x78] sm:$0xff] }
  0xcb   :  { %v168_v31 = vrot.slane %v84_v6, %v167_v20  ;;  %v554_v6 = vpack.c.bf16 %v342_v5, %v341_v4 }
  0xcc   :  { %v221_v45 = vsel %vm169_vm2, %v220_v30, %v216_v36 }
  0xcd   :  { %v111_v8 = vpop.xlane.xlu1 %110  ;;  %v170_v46 = vsel %vm169_vm2, %v168_v31, %v163_v37  ;;  %555 = vmatpush3.bf16.msra.mxu1 %v554_v6 }
  0xce   :  { %v87_v9 = vpop.xlane.xlu0 %86  ;;  %v225_v33 = vrot.slane %v111_v8, %v174_v22 }
  0xcf   :  { %v175_v34 = vrot.slane %v87_v9, %v174_v22 }
  0xd0   :  { %v226_v49 = vsel %vm176_vm3, %v225_v33, %v221_v45 }
  0xd1   :  { %v114_v11 = vpop.xlane.xlu1 %113  ;;  %v177_v50 = vsel %vm176_vm3, %v175_v34, %v170_v46 }
  0xd2   :  { %v90_v12 = vpop.xlane.xlu0 %89  ;;  %v230_v38 = vrot.slane %v114_v11, %v181_v25 }
  0xd3   :  { %v182_v39 = vrot.slane %v90_v12, %v181_v25  ;;  %v439_v12 = vld [vmem:[%s799_s4] ss:$0 sm:$0xff] }
  0xd4   :  { %v231_v53 = vsel %vm183_vm4, %v230_v38, %v226_v49 }
  0xd5   :  { %v117_v18 = vpop.xlane.xlu1 %116  ;;  %v184_v54 = vsel %vm183_vm4, %v182_v39, %v177_v50 }
  0xd6   :  { %v93_v19 = vpop.xlane.xlu0 %92  ;;  %v235_v40 = vrot.slane %v117_v18, %v188_v26 }
  0xd7   :  { %v189_v41 = vrot.slane %v93_v19, %v188_v26 }
  0xd8   :  { %v236_v55 = vsel %vm190_vm5, %v235_v40, %v231_v53 }
  0xd9   :  { %v120_v27 = vpop.xlane.xlu1 %119  ;;  %v191_v56 = vsel %vm190_vm5, %v189_v41, %v184_v54 }
  0xda   :  { %v96_v28 = vpop.xlane.xlu0 %95  ;;  %v240_v47 = vrot.slane %v120_v27, %v195_v32 }
  0xdb   :  { %v196_v48 = vrot.slane %v96_v28, %v195_v32 }
  0xdc   :  { %v241_v59 = vsel %vm197_vm6, %v240_v47, %v236_v55 }
  0xdd   :  { %v123_v42 = vpop.xlane.xlu1 %122  ;;  %v198_v60 = vsel %vm197_vm6, %v196_v48, %v191_v56 }
  0xde   :  { %v99_v43 = vpop.xlane.xlu0 %98  ;;  %v245_v51 = vrot.slane %v123_v42, %v202_v35 }
  0xdf   :  { %v203_v52 = vrot.slane %v99_v43, %v202_v35 }
  0xe0   :  { %v246_v63 = vsel %vm204_vm7, %v245_v51, %v241_v59 }
  0xe1   :  { %v126_v57 = vpop.xlane.xlu1 %125  ;;  %v205_v0 = vsel %vm204_vm7, %v203_v52, %v198_v60 }
  0xe2   :  { %v102_v58 = vpop.xlane.xlu0 %101  ;;  %v250_v61 = vrot.slane %v126_v57, %v209_v44 }
  0xe3   :  { %v210_v62 = vrot.slane %v102_v58, %v209_v44 }
  0xe4   :  { %v251_v1 = vsel %vm211_vm8, %v250_v61, %v246_v63 }
  0xe5   :  { %v212_v2 = vsel %vm211_vm8, %v210_v62, %v205_v0 }
  0xe6   :  { %v253_v3 = vsel %vm252_vm9, %v251_v1, %v212_v2 }
  0xe7   :  { %483 = vmatmul.mubr.msk.f32.vlgmr.msra.gmra.mrb[0].mxu0 %vm78_vm0, %v253_v3 }
 0x1ba   :  { %v322_v8 = vpop.f32.mrb[0].mxu0 }
 0x1bb   :  { %v323_v9 = vadd.f32 %v437_v7, %v322_v8  ;;  %v484_v10 = vpop.f32.mrb[1].mxu0 }
 0x1bd   :  { %v326_v11 = vmax.f32 %v323_v9, 0.0 }
 0x1bf   :  { %518 = vmatmul.mubr.f32.vlgmr.msra.gmra.mrb[0].mxu1 %v326_v11 }
 0x292   :  { %v416_v13 = vpop.f32.mrb[0].mxu1 }
 0x293   :  { %v417_v14 = vadd.f32 %v439_v12, %v416_v13  ;;  %v519_v15 = vpop.f32.mrb[1].mxu1 }
 0x295   :  { %420 = vst [vmem:[#allocation8] sm:$0x3] %v417_v14 }
 0x296   :  { %642 = shalt.err (!%p639_p0)
}
 0x297   :  { %s643_s11 = scalar_lea.hbm %s800_s5, 32 }
 0x298   :  { %p644_p1 = scmp.ne.s32.totalorder %s800_s5, %s643_s11  ;;  %p647_p2 = scmp.lt.u32.totalorder %s643_s11, %s800_s5 }
 0x29a   :  { %p649_p3 = pnand %p647_p2, %p644_p1 }
 0x29c   :  { %652 = shalt.err (!%p649_p3)
}
 0x29d   :  { %430 = dma.vmem_to_hbm [thread:$0]  %s428_s8, 32, %s800_s5, [#allocation4]  }
 0x29e   :  { %657 = dma.done.wait [#allocation4], 32  }
 0x29f   :  { %658 = vsyncadd [#allocation4], 4294967264 }
 0x2a0   :  { %434 = vsyncpa [#allocation3], 1 }
 0x2a1   :  { %435 = vsyncpa [#allocation6], 1 }
 0x2a2   :  { %436 = vsyncpa [#allocation4], 1 }

</bundles_post_ra>
